<compile_context>
chip_gen: v7x
topology: tpu7x:2x2x1
jax: 0.10.0
libtpu: 0.0.40
codegen_flags: <defaults>
</compile_context>

<pallas_src>
import jax
import jax.numpy as jnp
import numpy as np
from jax.experimental import pallas as pl
from jax.experimental.pallas import tpu as pltpu

EPS = 1e-5  # nn.BatchNorm2d default eps


# --------------------------------------------------------------------------
# Pass 1: one im2col GEMM per tile (MXU) + tile-local BN partial statistics
# --------------------------------------------------------------------------
def _conv_stats_kernel(x_ref, w_ref, y_ref, s_ref, ss_ref, acc_ref):
    # x_ref  : (1, tp, KKC)    im2col patch tile (compute dtype, lane-dense K)
    # w_ref  : (KKC, Cout)     folded conv weights (resident; index_map constant)
    # y_ref  : (1, tp, Cout)   conv output tile (compute dtype)
    # s_ref, ss_ref : (1, 1, 1, Cout)  per-tile per-channel sum / sum-of-squares
    # acc_ref: VMEM (tp, Cout) f32 scratch accumulator (avoids vreg spills)
    acc_ref[...] = jnp.dot(x_ref[0], w_ref[...], preferred_element_type=jnp.float32)
    acc = acc_ref[...]
    y_ref[0] = acc.astype(y_ref.dtype)
    # XLU reductions + one VALU mult: free filler next to the MXU-bound GEMM.
    s_ref[0, 0, 0, :] = jnp.sum(acc, axis=0)
    ss_ref[0, 0, 0, :] = jnp.sum(acc * acc, axis=0)


# --------------------------------------------------------------------------
# Pass 2: streamed BN apply (folded scale/shift) fused with NHWC->NCHW transpose
# --------------------------------------------------------------------------
def _bn_apply_kernel(y_ref, scale_ref, shift_ref, o_ref):
    # y_ref: (1, tp, Cout); scale/shift: (1, Cout); o_ref: (1, Cout, tp)
    y = y_ref[0].astype(jnp.float32) * scale_ref[...] + shift_ref[...]
    o_ref[0] = jnp.transpose(y).astype(o_ref.dtype)


def _vmem_cap_bytes(default=48 * 1024 * 1024):
    # ~75% of physical VMEM: 48 MiB on v7x (64 MiB/TC), 96 MiB on v5e/v6e (128 MiB).
    try:
        return int(0.75 * pltpu.get_tpu_info().vmem_capacity_bytes)
    except Exception:  # conservative fallback that fits every generation
        return default


def _pick_row_tile(h_out, w_out, kkc, c_out, itemsize,
                   budget_bytes=8 * 1024 * 1024):
    """Pick row_tile so tp = row_tile*w_out fills the MXU M dim (prefer multiples
    of 256, then 128), keeps the sublane dim aligned, and fits the tile budget."""
    best, best_rank = None, None
    for cand in range(1, h_out + 1):
        if h_out % cand:
            continue
        tp = cand * w_out
        if tp % 8 and cand != h_out:        # keep second-minor dim (8,128)-friendly
            continue
        # double-buffered input + output tiles (compute dtype) + f32 acc scratch
        tile_bytes = 2 * tp * (kkc + c_out) * itemsize + tp * c_out * 4
        fits = tile_bytes <= budget_bytes
        rank = (fits, tp % 256 == 0, tp % 128 == 0, tp if fits else -tp)
        if best_rank is None or rank > best_rank:
            best, best_rank = cand, rank
    return best


def aspp_forward(x, weight, gamma, beta, *, padding, dilation, eps=EPS,
                 row_tile=None, compute_dtype=jnp.bfloat16,
                 out_dtype=jnp.float32):
    """x: (N, Cin, H, W) NCHW; weight: (Cout, Cin, K, K); gamma/beta: (Cout,)."""
    n, c_in, h, w = x.shape
    c_out, c_in_w, kh_, kw_ = weight.shape
    if c_in_w != c_in or kh_ != kw_:
        raise ValueError("expected square conv kernel with matching in-channels")
    k, d, p = kh_, dilation, padding

    hp, wp = h + 2 * p, w + 2 * p
    h_out = hp - d * (k - 1)
    w_out = wp - d * (k - 1)
    kkc = k * k * c_in
    cdt = jnp.dtype(compute_dtype)

    # ---- wrapper-side layout plumbing (no conv arithmetic happens here) -------
    # NCHW -> NHWC, pad the spatial halo once, then fold the k*k taps with Cin
    # into the last (lane) axis: im2col of shape (N, h_out*w_out, k*k*Cin).
    x_nhwc = jnp.transpose(x, (0, 2, 3, 1))
    x_pad = jnp.pad(x_nhwc, ((0, 0), (p, p), (p, p), (0, 0)))
    cols = [x_pad[:, kh * d:kh * d + h_out, kw * d:kw * d + w_out, :]
            for kh in range(k) for kw in range(k)]
    x_cols = jnp.concatenate(cols, axis=-1).reshape(n, h_out * w_out, kkc).astype(cdt)
    # OIHW -> (K, K, Cin, Cout) -> (K*K*Cin, Cout); row order matches the concat.
    w_cols = jnp.transpose(weight, (2, 3, 1, 0)).reshape(kkc, c_out).astype(cdt)

    if row_tile is None:
        row_tile = _pick_row_tile(h_out, w_out, kkc, c_out, cdt.itemsize)
    if h_out % row_tile != 0:
        raise ValueError(f"row_tile={row_tile} must divide h_out={h_out}")
    n_tiles = h_out // row_tile
    tp = row_tile * w_out                     # GEMM M dim per tile

    # VMEM: double-buffered input/output tiles + weights + f32 scratch + stats.
    tile_bytes = (2 * tp * kkc * cdt.itemsize
                  + 2 * kkc * c_out * cdt.itemsize
                  + 2 * tp * c_out * cdt.itemsize
                  + tp * c_out * 4
                  + 4 * c_out * 4)
    # TODO(synk): pipeline_mode=pl.Buffered(1) on the grid-invariant weight spec
    # would halve its VMEM footprint; omitted for lowering robustness.
    vmem_limit = int(min(max(32 * 1024 * 1024, 2 * tile_bytes), _vmem_cap_bytes()))

    conv_flops = 2 * n * h_out * w_out * kkc * c_out
    conv_bytes = (x_cols.size * cdt.itemsize + w_cols.size * cdt.itemsize
                  + n * h_out * w_out * c_out * cdt.itemsize
                  + 2 * n * n_tiles * c_out * 4)

    y, s, ss = pl.pallas_call(
        _conv_stats_kernel,
        grid=(n, n_tiles),
        in_specs=[
            pl.BlockSpec((1, tp, kkc), lambda i, t: (i, t, 0)),
            pl.BlockSpec((kkc, c_out), lambda i, t: (0, 0)),
        ],
        out_specs=[
            pl.BlockSpec((1, tp, c_out), lambda i, t: (i, t, 0)),
            pl.BlockSpec((1, 1, 1, c_out), lambda i, t: (i, t, 0, 0)),
            pl.BlockSpec((1, 1, 1, c_out), lambda i, t: (i, t, 0, 0)),
        ],
        out_shape=(
            jax.ShapeDtypeStruct((n, h_out * w_out, c_out), cdt),
            jax.ShapeDtypeStruct((n, n_tiles, 1, c_out), jnp.float32),
            jax.ShapeDtypeStruct((n, n_tiles, 1, c_out), jnp.float32),
        ),
        scratch_shapes=[pltpu.VMEM((tp, c_out), jnp.float32)],
        compiler_params=pltpu.CompilerParams(
            dimension_semantics=("parallel", "parallel"),
            vmem_limit_bytes=vmem_limit),
        cost_estimate=pl.CostEstimate(flops=conv_flops, transcendentals=0,
                                      bytes_accessed=conv_bytes),
    )(x_cols, w_cols)

    # Global training-mode BN statistics from the tiny per-tile partials (plain JAX).
    count = n * h_out * w_out
    mean = jnp.sum(s, axis=(0, 1, 2)) / count
    ex2 = jnp.sum(ss, axis=(0, 1, 2)) / count
    var = jnp.maximum(ex2 - mean * mean, 0.0)          # clamp: guards cancellation
    scale = gamma.astype(jnp.float32) * jax.lax.rsqrt(var + eps)
    shift = beta.astype(jnp.float32) - mean * scale
    scale = scale.reshape(1, c_out)
    shift = shift.reshape(1, c_out)

    out = pl.pallas_call(
        _bn_apply_kernel,
        grid=(n, n_tiles),
        in_specs=[
            pl.BlockSpec((1, tp, c_out), lambda i, t: (i, t, 0)),
            pl.BlockSpec((1, c_out), lambda i, t: (0, 0)),
            pl.BlockSpec((1, c_out), lambda i, t: (0, 0)),
        ],
        out_specs=pl.BlockSpec((1, c_out, tp), lambda i, t: (i, 0, t)),
        out_shape=jax.ShapeDtypeStruct((n, c_out, h_out * w_out), out_dtype),
        compiler_params=pltpu.CompilerParams(
            dimension_semantics=("parallel", "parallel"),
            vmem_limit_bytes=32 * 1024 * 1024),
    )(y, scale, shift)

    # NCHW already produced in-kernel; only a metadata reshape remains.
    return out.reshape(n, c_out, h_out, w_out)


def aspp_reference(x, weight, gamma, beta, *, padding, dilation, eps=EPS):
    """Pure-JAX reference: dilated conv (no bias) + BatchNorm2d in training mode."""
    y = jax.lax.conv_general_dilated(
        x, weight, window_strides=(1, 1),
        padding=((padding, padding), (padding, padding)),
        rhs_dilation=(dilation, dilation),
        dimension_numbers=("NCHW", "OIHW", "NCHW"),
        precision=jax.lax.Precision.HIGHEST)
    mean = jnp.mean(y, axis=(0, 2, 3), keepdims=True)
    var = jnp.var(y, axis=(0, 2, 3), keepdims=True)    # biased, as BN train mode
    y = (y - mean) * jax.lax.rsqrt(var + eps)
    return y * gamma[None, :, None, None] + beta[None, :, None, None]


if __name__ == "__main__":
    key = jax.random.PRNGKey(0)
    N, Cin, H, W = 2, 32, 16, 16
    Cout = 128

    k1, k2, k3, k4, k5 = jax.random.split(key, 5)
    x = jax.random.normal(k1, (N, Cin, H, W), jnp.float32)
    gamma = 1.0 + 0.1 * jax.random.normal(k3, (Cout,), jnp.float32)
    beta = 0.1 * jax.random.normal(k4, (Cout,), jnp.float32)

    # ASPP 3x3 atrous branch: kernel_size=3, padding=dilation=2.
    # (row_tile auto-picked: h_out=w_out=16 -> tp=256, a full MXU M pass.)
    w3 = jax.random.normal(k2, (Cout, Cin, 3, 3), jnp.float32) * (2.0 / (Cin * 9)) ** 0.5
    out3 = jax.block_until_ready(
        aspp_forward(x, w3, gamma, beta, padding=2, dilation=2))
    ref3 = aspp_reference(x, w3, gamma, beta, padding=2, dilation=2)
    # bf16-in / f32-accumulate GEMM vs an f32 reference -> 2e-2 tolerance.
    np.testing.assert_allclose(np.asarray(out3), np.asarray(ref3),
                               rtol=2e-2, atol=2e-2)

    # ASPP 1x1 branch: kernel_size=1, padding=0, dilation=1.
    w1 = jax.random.normal(k5, (Cout, Cin, 1, 1), jnp.float32) * (2.0 / Cin) ** 0.5
    out1 = jax.block_until_ready(
        aspp_forward(x, w1, gamma, beta, padding=0, dilation=1))
    ref1 = aspp_reference(x, w1, gamma, beta, padding=0, dilation=1)
    np.testing.assert_allclose(np.asarray(out1), np.asarray(ref1),
                               rtol=2e-2, atol=2e-2)

    print("KERNEL_OK")
</pallas_src>

<mosaic_0001>
module attributes {stable_mosaic.version = 11 : i64} {
  func.func @_conv_stats_kernel(%arg0: i32, %arg1: i32, %arg2: memref<1x256x288xbf16, #tpu.memory_space<vmem>>, %arg3: memref<288x128xbf16, #tpu.memory_space<vmem>>, %arg4: memref<1x256x128xbf16, #tpu.memory_space<vmem>>, %arg5: memref<1x1x1x128xf32, #tpu.memory_space<vmem>>, %arg6: memref<1x1x1x128xf32, #tpu.memory_space<vmem>>, %arg7: memref<256x128xf32, #tpu.memory_space<vmem>>) attributes {dimension_semantics = [#tpu.dimension_semantics<parallel>, #tpu.dimension_semantics<parallel>], iteration_bounds = array<i64: 2, 1>, scalar_prefetch = 0 : i64, scratch_operands = 1 : i64, tpu.core_type = #tpu.core_type<tc>, window_params = [{transform_indices = @transform_0, window_bounds = array<i64: 1, 256, 288>}, {pipeline_mode = #tpu.pipeline_mode<synchronous>, transform_indices = @transform_1, window_bounds = array<i64: 288, 128>}, {transform_indices = @transform_2, window_bounds = array<i64: 1, 256, 128>}, {transform_indices = @transform_3, window_bounds = array<i64: 1, 1, 1, 128>}, {transform_indices = @transform_4, window_bounds = array<i64: 1, 1, 1, 128>}]} {
    %c0 = arith.constant 0 : index
    %c0_0 = arith.constant 0 : index
    %c0_1 = arith.constant 0 : index
    %0 = vector.load %arg2[%c0, %c0_0, %c0_1] : memref<1x256x288xbf16, #tpu.memory_space<vmem>>, vector<1x256x288xbf16>
    %1 = vector.shape_cast %0 : vector<1x256x288xbf16> to vector<256x288xbf16>
    %c0_2 = arith.constant 0 : index
    %c0_3 = arith.constant 0 : index
    %2 = vector.load %arg3[%c0_2, %c0_3] : memref<288x128xbf16, #tpu.memory_space<vmem>>, vector<288x128xbf16>
    %cst = arith.constant dense<0.000000e+00> : vector<256x128xf32>
    %3 = tpu.matmul %1, %2, %cst {dimension_numbers = #tpu.dot_dimension_numbers<[1], [0], [0], [1], [0, 0, 1, 1], [], []>} : vector<256x288xbf16>, vector<288x128xbf16>, vector<256x128xf32> -> vector<256x128xf32>
    %c0_4 = arith.constant 0 : index
    %c0_5 = arith.constant 0 : index
    %4 = vector.load %arg7[%c0_4, %c0_5] : memref<256x128xf32, #tpu.memory_space<vmem>>, vector<256x128xf32>
    tpu.vector_store %arg7[%c0_4, %c0_5], %3 {strides = array<i32>} : memref<256x128xf32, #tpu.memory_space<vmem>>, vector<256x128xf32>,
    %c0_6 = arith.constant 0 : index
    %c0_7 = arith.constant 0 : index
    %5 = vector.load %arg7[%c0_6, %c0_7] : memref<256x128xf32, #tpu.memory_space<vmem>>, vector<256x128xf32>
    %6 = arith.truncf %5 : vector<256x128xf32> to vector<256x128xbf16>
    %c0_8 = arith.constant 0 : index
    %c0_9 = arith.constant 0 : index
    %c0_10 = arith.constant 0 : index
    %7 = vector.load %arg4[%c0_8, %c0_9, %c0_10] : memref<1x256x128xbf16, #tpu.memory_space<vmem>>, vector<1x256x128xbf16>
    %8 = vector.shape_cast %7 : vector<1x256x128xbf16> to vector<256x128xbf16>
    %9 = vector.shape_cast %6 : vector<256x128xbf16> to vector<1x256x128xbf16>
    tpu.vector_store %arg4[%c0_8, %c0_9, %c0_10], %9 {strides = array<i32>} : memref<1x256x128xbf16, #tpu.memory_space<vmem>>, vector<1x256x128xbf16>,
    %cst_11 = arith.constant dense<0.000000e+00> : vector<128xf32>
    %10 = vector.multi_reduction <add>, %5, %cst_11 [0] : vector<256x128xf32> to vector<128xf32>
    %c0_12 = arith.constant 0 : index
    %c0_13 = arith.constant 0 : index
    %c0_14 = arith.constant 0 : index
    %c0_15 = arith.constant 0 : index
    %11 = vector.load %arg5[%c0_12, %c0_13, %c0_14, %c0_15] : memref<1x1x1x128xf32, #tpu.memory_space<vmem>>, vector<1x1x1x128xf32>
    %12 = vector.shape_cast %11 : vector<1x1x1x128xf32> to vector<128xf32>
    %13 = vector.shape_cast %10 : vector<128xf32> to vector<1x1x1x128xf32>
    tpu.vector_store %arg5[%c0_12, %c0_13, %c0_14, %c0_15], %13 {strides = array<i32>} : memref<1x1x1x128xf32, #tpu.memory_space<vmem>>, vector<1x1x1x128xf32>,
    %14 = arith.mulf %5, %5 : vector<256x128xf32>
    %cst_16 = arith.constant dense<0.000000e+00> : vector<128xf32>
    %15 = vector.multi_reduction <add>, %14, %cst_16 [0] : vector<256x128xf32> to vector<128xf32>
    %c0_17 = arith.constant 0 : index
    %c0_18 = arith.constant 0 : index
    %c0_19 = arith.constant 0 : index
    %c0_20 = arith.constant 0 : index
    %16 = vector.load %arg6[%c0_17, %c0_18, %c0_19, %c0_20] : memref<1x1x1x128xf32, #tpu.memory_space<vmem>>, vector<1x1x1x128xf32>
    %17 = vector.shape_cast %16 : vector<1x1x1x128xf32> to vector<128xf32>
    %18 = vector.shape_cast %15 : vector<128xf32> to vector<1x1x1x128xf32>
    tpu.vector_store %arg6[%c0_17, %c0_18, %c0_19, %c0_20], %18 {strides = array<i32>} : memref<1x1x1x128xf32, #tpu.memory_space<vmem>>, vector<1x1x1x128xf32>,
    return
  }
  func.func @transform_0(%arg0: i32, %arg1: i32) -> (i32, i32, i32) {
    %c0_i32 = arith.constant 0 : i32
    %c0_i32_0 = arith.constant 0 : i32
    return %arg0, %arg1, %c0_i32 : i32, i32, i32
  }
  func.func @transform_1(%arg0: i32, %arg1: i32) -> (i32, i32) {
    %c0_i32 = arith.constant 0 : i32
    %c0_i32_0 = arith.constant 0 : i32
    %c0_i32_1 = arith.constant 0 : i32
    return %c0_i32, %c0_i32_0 : i32, i32
  }
  func.func @transform_2(%arg0: i32, %arg1: i32) -> (i32, i32, i32) {
    %c0_i32 = arith.constant 0 : i32
    %c0_i32_0 = arith.constant 0 : i32
    return %arg0, %arg1, %c0_i32 : i32, i32, i32
  }
  func.func @transform_3(%arg0: i32, %arg1: i32) -> (i32, i32, i32, i32) {
    %c0_i32 = arith.constant 0 : i32
    %c0_i32_0 = arith.constant 0 : i32
    %c0_i32_1 = arith.constant 0 : i32
    return %arg0, %arg1, %c0_i32, %c0_i32_0 : i32, i32, i32, i32
  }
  func.func @transform_4(%arg0: i32, %arg1: i32) -> (i32, i32, i32, i32) {
    %c0_i32 = arith.constant 0 : i32
    %c0_i32_0 = arith.constant 0 : i32
    %c0_i32_1 = arith.constant 0 : i32
    return %arg0, %arg1, %c0_i32, %c0_i32_0 : i32, i32, i32, i32
  }
}

</mosaic_0001>

<bundles_post_ra>
// kernel: tpu_custom_call.1
= control target key start
LH: loop header
LB: loop body
LE: loop exit
PB: predicated region body
PF: predicated region fallthrough
CT: control target
= control target key end

     0   :  { %10 = vsyncpa [#allocation4], 0  ;;  %s2744_s0 = inlined_call_operand.vmem [shape: bf16[2,256,288], index: 0, kind: input, shape index: {}]   ;;  %s2745_s1 = inlined_call_operand.vmem [shape: bf16[288,128], index: 1, kind: input, shape index: {}]   ;;  %s2746_s2 = inlined_call_operand.hbm [shape: bf16[2,256,128], index: 2, kind: output, shape index: {0}]   ;;  %s2747_s3 = inlined_call_operand.hbm [shape: f32[2,1,1,128], index: 3, kind: output, shape index: {1}]   ;;  %s2748_s4 = inlined_call_operand.hbm [shape: f32[2,1,1,128], index: 4, kind: output, shape index: {2}]  }
   0x1   :  { %12 = vsyncpa [#allocation4 + $0x1], 0 }
   0x2   :  { %13 = vsyncpa [#allocation6], 0 }
   0x3   :  { %15 = vsyncpa [#allocation6 + $0x1], 0  ;;  %s2349_s15 = smov 0   ;;  %s2351_s16 = smov 0  }
   0x4   :  { %s2353_s17 = smov 0   ;;  %s2355_s18 = smov 0  }
   0x5   :  { %s2357_s19 = smov 0   ;;  %s2359_s20 = smov 0  }
   0x6 LB: > { %s1591_s21 = sadd.s32 4294967295, %s2317_s20   ;;  %s1592_s22 = sadd.s32 4294967294, %s2317_s20   ;;  %s2317_s20 = sphi %s2359_s20, %s21_s20   ;;  %s2313_s19 = sphi %s2357_s19, %s2755_s19   ;;  %s2309_s18 = sphi %s2355_s18, %s2754_s18   ;;  %s2305_s17 = sphi %s2353_s17, %s2753_s17   ;;  %s2301_s16 = sphi %s2351_s16, %s2752_s16   ;;  %s2297_s15 = sphi %s2349_s15, %s2751_s15  }
   0x7   : > { %s33_s23 = sadd.s32 1, %s2313_s19  ;;  %s91_s24 = sadd.s32 1, %s2305_s17 }
   0x8   : > { %p35_p0 = scmp.ge.s32.totalorder %s33_s23, 2  ;;  %p101_p1 = scmp.ne.s32.totalorder %s2305_s17, %s2301_s16 }
   0x9   : > { %p102_p2 = scmp.eq.s32.totalorder %s1591_s21, 1  ;;  %p107_p3 = scmp.ne.s32.totalorder %s2301_s16, %s2297_s15 }
   0xa   : > { %s2757_s23 = smov (%p35_p0, %s33_s23), 0  ;;  %p108_p5 = scmp.eq.s32.totalorder %s1592_s22, 1 }
   0xb   : > { %p2391_p4 = por %p102_p2, %p101_p1  ;;  %s86_s26 = ssub.s32 %s2313_s19, %s2757_s23 }
   0xc   : > { %p1595_p6 = scmp.ge.s32.totalorder %s2317_s20, 1  ;;  %p89_p7 = scmp.eq.s32.totalorder %s86_s26, 0 }
   0xd   : > { %p2400_p8 = por %p108_p5, %p107_p3  ;;  %p199_p9 = scmp.lt.s32.totalorder %s2317_s20, 3 }
   0xe   : > { %s2406_s28 = scalar_select %p89_p7, %s2305_s17, %s91_s24  }
   0xf   : > { %p200_p10 = pnand %p1595_p6, %p199_p9 }
  0x10   : > { %v2097_v0 = vld [vmem:[%s2745_s1 + $0x40] sm:$0xff] (!%p200_p10)   ;;  %v2099_v2 = vld [vmem:[%s2745_s1 + $0x48] sm:$0xff] (!%p200_p10)   ;;  %p239_p11 = scmp.lt.s32.totalorder (!%p200_p10), %s2309_s18, 1  ;;  %v2101_v4 = vld [vmem:[%s2745_s1 + $0x50] sm:$0xff] (!%p200_p10)   ;;  %vm699_vm0 = vcmask (!%p200_p10), 261120   ;;  %s1751_s5 = sshll.u32 (!%p200_p10), %s2309_s18, 11 }
  0x11   : > { %203 = sbr.rel (%p200_p10) target bundleno = 433 (0x1b1), region = 28  ;;  %v2098_v1 = vld [vmem:[%s2745_s1] sm:$0xff] (!%p200_p10)   ;;  %1847 = vmatprep.subr.bf16.mxu0 (!%p200_p10), %v2097_v0  ;;  %2013 = vmatprep.subr.bf16.mxu1 (!%p200_p10), %v2097_v0  ;;  %v2100_v3 = vld [vmem:[%s2745_s1 + $0x8] sm:$0xff] (!%p200_p10)   ;;  %v2102_v5 = vld [vmem:[%s2745_s1 + $0x10] sm:$0xff] (!%p200_p10)   ;;  %s2600_s9 = scalar_lea.hbm (!%p200_p10), %s2746_s2, %s1751_s5 }
  0x12   : > { %1848 = vmatpush3.bf16.msra.mxu0 (!%p200_p10), %v2098_v1  ;;  %2021 = vmatpush3.bf16.msra.mxu1 (!%p200_p10), %v2098_v1  ;;  %v2103_v6 = vld [vmem:[%s2745_s1 + $0x58] sm:$0xff] (!%p200_p10)   ;;  %v2105_v8 = vld [vmem:[%s2745_s1 + $0x60] sm:$0xff] (!%p200_p10)   ;;  %v2107_v10 = vld [vmem:[%s2745_s1 + $0x68] sm:$0xff] (!%p200_p10)  }
  0x13   : > { %1849 = vmatprep.subr.bf16.mxu0 (!%p200_p10), %v2099_v2  ;;  %2014 = vmatprep.subr.bf16.mxu1 (!%p200_p10), %v2099_v2  ;;  %v2104_v7 = vld [vmem:[%s2745_s1 + $0x18] sm:$0xff] (!%p200_p10)   ;;  %v2106_v9 = vld [vmem:[%s2745_s1 + $0x20] sm:$0xff] (!%p200_p10)   ;;  %v2108_v13 = vld [vmem:[%s2745_s1 + $0x28] sm:$0xff] (!%p200_p10)  }
  0x14   : > { %v2109_v14 = vld [vmem:[%s2745_s1 + $0x70] sm:$0xff] (!%p200_p10)   ;;  %v2111_v16 = vld [vmem:[%s2745_s1 + $0x78] sm:$0xff] (!%p200_p10)   ;;  %v2125_v18 = vld [vmem:[%s2745_s1 + $0x80] sm:$0xff] (!%p200_p10)  }
  0x15   : > { %v2110_v15 = vld [vmem:[%s2745_s1 + $0x30] sm:$0xff] (!%p200_p10)   ;;  %v2112_v17 = vld [vmem:[%s2745_s1 + $0x38] sm:$0xff] (!%p200_p10)   ;;  %v2138_v23 = vld [vmem:[%s2745_s1 + $0x88] sm:$0xff] (!%p200_p10)  }
  0x16   : > { %1850 = vmatpush3.bf16.msra.mxu0 (!%p200_p10), %v2100_v3  ;;  %2022 = vmatpush3.bf16.msra.mxu1 (!%p200_p10), %v2100_v3 }
  0x17   : > { %1851 = vmatprep.subr.bf16.mxu0 (!%p200_p10), %v2101_v4  ;;  %2015 = vmatprep.subr.bf16.mxu1 (!%p200_p10), %v2101_v4 }
  0x18   : > { %s240_s13 = scalar_select %p239_p11, %s2309_s18, 1 }
  0x1a   : > { %s2029_s30 = smul.u32 384, %s240_s13  ;;  %1852 = vmatpush3.bf16.msra.mxu0 %v2102_v5  ;;  %2023 = vmatpush3.bf16.msra.mxu1 %v2102_v5  ;;  %s2319_s13 = smov [#allocation3]  }
  0x1b   : > { %1853 = vmatprep.subr.bf16.mxu0 %v2103_v6  ;;  %2016 = vmatprep.subr.bf16.mxu1 %v2103_v6  ;;  %s2183_s14 = sshll.u32 %s2319_s13, 4  ;;  %s2184_s14 = int_to_ptr.vmem [resolvable:$false] %s2183_s14 }
  0x1c   : > { %s2440_s11 = scalar_lea.vmem %s2744_s0, %s2029_s30  ;;  %s2185_s24 = scalar_lea.vmem %s2184_s14, 4096 }
  0x1d   : > { %v2115_v11 = vld [vmem:[%s2440_s11 + $0x4] ss:$12 sps:$4 sm:$0xff]   ;;  %v2113_v19 = vld [vmem:[%s2440_s11] ss:$12 sps:$4 sm:$0xff]   ;;  %v2119_v21 = vld [vmem:[%s2440_s11 + $0x1c] ss:$12 sps:$4 sm:$0xff]  }
  0x1e   : > { %1854 = vmatpush3.bf16.msra.mxu0 %v2104_v7  ;;  %2024 = vmatpush3.bf16.msra.mxu1 %v2104_v7  ;;  %v2118_v12 = vld [vmem:[%s2440_s11 + $0x124] ss:$12 sps:$4 sm:$0xff]   ;;  %v2116_v20 = vld [vmem:[%s2440_s11 + $0x120] ss:$12 sps:$4 sm:$0xff]   ;;  %v2121_v22 = vld [vmem:[%s2440_s11 + $0x13c] ss:$12 sps:$4 sm:$0xff]  }
  0x1f   : > { %1855 = vmatprep.subr.bf16.mxu0 %v2105_v8  ;;  %2017 = vmatprep.subr.bf16.mxu1 %v2105_v8  ;;  %v2123_v24 = vld [vmem:[%s2440_s11 + $0x18] ss:$12 sps:$4 sm:$0xff]   ;;  %v2126_v26 = vld [vmem:[%s2440_s11 + $0x34] ss:$12 sps:$4 sm:$0xff]   ;;  %v2130_v28 = vld [vmem:[%s2440_s11 + $0x30] ss:$12 sps:$4 sm:$0xff]  }
  0x20   : > { %780 = vmatprep.mubr.bf16.mxu0 %v2115_v11  ;;  %876 = vmatprep.mubr.bf16.mxu1 %v2118_v12  ;;  %v2124_v25 = vld [vmem:[%s2440_s11 + $0x138] ss:$12 sps:$4 sm:$0xff]   ;;  %v2128_v27 = vld [vmem:[%s2440_s11 + $0x154] ss:$12 sps:$4 sm:$0xff]   ;;  %v2131_v29 = vld [vmem:[%s2440_s11 + $0x150] ss:$12 sps:$4 sm:$0xff]  }
  0x21   : > { %v2132_v30 = vld [vmem:[%s2440_s11 + $0x4c] ss:$12 sps:$4 sm:$0xff]   ;;  %v2136_v32 = vld [vmem:[%s2440_s11 + $0x48] ss:$12 sps:$4 sm:$0xff]   ;;  %v2139_v34 = vld [vmem:[%s2440_s11 + $0x64] ss:$12 sps:$4 sm:$0xff]  }
  0x22   : > { %1856 = vmatpush3.bf16.msra.mxu0 %v2106_v9  ;;  %2025 = vmatpush3.bf16.msra.mxu1 %v2106_v9  ;;  %v2134_v31 = vld [vmem:[%s2440_s11 + $0x16c] ss:$12 sps:$4 sm:$0xff]   ;;  %v2137_v33 = vld [vmem:[%s2440_s11 + $0x168] ss:$12 sps:$4 sm:$0xff]   ;;  %v2148_v41 = vld [vmem:[%s2440_s11 + $0x50] ss:$12 sps:$4 sm:$0xff]  }
  0x23   : > { %1857 = vmatprep.subr.bf16.mxu0 %v2107_v10  ;;  %2018 = vmatprep.subr.bf16.mxu1 %v2107_v10  ;;  %v2141_v35 = vld [vmem:[%s2440_s11 + $0x8] ss:$12 sps:$4 sm:$0xff]   ;;  %v2142_v36 = vld [vmem:[%s2440_s11 + $0x60] ss:$12 sps:$4 sm:$0xff]   ;;  %v2146_v39 = vld [vmem:[%s2440_s11 + $0x38] ss:$12 sps:$4 sm:$0xff]  }
  0x24   : > { %v2143_v37 = vld [vmem:[%s2440_s11 + $0x20] ss:$12 sps:$4 sm:$0xff]   ;;  %v2144_v38 = vld [vmem:[%s2440_s11 + $0x7c] ss:$12 sps:$4 sm:$0xff]   ;;  %v2147_v40 = vld [vmem:[%s2440_s11 + $0x78] ss:$12 sps:$4 sm:$0xff]  }
  0x25   : > { %v2149_v42 = vld [vmem:[%s2440_s11 + $0x94] ss:$12 sps:$4 sm:$0xff]   ;;  %v2152_v44 = vld [vmem:[%s2440_s11 + $0x90] ss:$12 sps:$4 sm:$0xff]   ;;  %v2154_v46 = vld [vmem:[%s2440_s11 + $0xac] ss:$12 sps:$4 sm:$0xff]  }
  0x26   : > { %1858 = vmatpush3.bf16.msra.mxu0 %v2108_v13  ;;  %2026 = vmatpush3.bf16.msra.mxu1 %v2108_v13  ;;  %v2151_v43 = vld [vmem:[%s2440_s11 + $0x68] ss:$12 sps:$4 sm:$0xff]   ;;  %v2153_v45 = vld [vmem:[%s2440_s11 + $0x80] ss:$12 sps:$4 sm:$0xff]   ;;  %v2156_v47 = vld [vmem:[%s2440_s11 + $0x98] ss:$12 sps:$4 sm:$0xff]  }
  0x27   : > { %1859 = vmatprep.subr.bf16.mxu0 %v2109_v14  ;;  %2019 = vmatprep.subr.bf16.mxu1 %v2109_v14  ;;  %v2157_v48 = vld [vmem:[%s2440_s11 + $0xa8] ss:$12 sps:$4 sm:$0xff]   ;;  %v2158_v49 = vld [vmem:[%s2440_s11 + $0xb0] ss:$12 sps:$4 sm:$0xff]   ;;  %v2162_v52 = vld [vmem:[%s2440_s11 + $0xc0] ss:$12 sps:$4 sm:$0xff]  }
  0x28   : > { %v2159_v50 = vld [vmem:[%s2440_s11 + $0xc4] ss:$12 sps:$4 sm:$0xff]   ;;  %v2161_v51 = vld [vmem:[%s2440_s11 + $0xc8] ss:$12 sps:$4 sm:$0xff]   ;;  %v2163_v53 = vld [vmem:[%s2440_s11 + $0xe0] ss:$12 sps:$4 sm:$0xff]  }
  0x29   : > { %v2164_v54 = vld [vmem:[%s2440_s11 + $0xdc] ss:$12 sps:$4 sm:$0xff]   ;;  %v2166_v55 = vld [vmem:[%s2440_s11 + $0xf8] ss:$12 sps:$4 sm:$0xff]   ;;  %v2169_v58 = vld [vmem:[%s2440_s11 + $0xf4] ss:$12 sps:$4 sm:$0xff]  }
  0x2a   : > { %1860 = vmatpush3.bf16.msra.mxu0 %v2110_v15  ;;  %2027 = vmatpush3.bf16.msra.mxu1 %v2110_v15  ;;  %v2167_v56 = vld [vmem:[%s2440_s11 + $0xd8] ss:$12 sps:$4 sm:$0xff]   ;;  %v2168_v57 = vld [vmem:[%s2440_s11 + $0x110] ss:$12 sps:$4 sm:$0xff]   ;;  %v2171_v59 = vld [vmem:[%s2440_s11 + $0x128] ss:$12 sps:$4 sm:$0xff]  }
  0x2b   : > { %1861 = vmatprep.subr.bf16.mxu0 %v2111_v16  ;;  %2020 = vmatprep.subr.bf16.mxu1 %v2111_v16  ;;  %v2172_v60 = vld [vmem:[%s2440_s11 + $0xf0] ss:$12 sps:$4 sm:$0xff]   ;;  %v2173_v61 = vld [vmem:[%s2440_s11 + $0x140] ss:$12 sps:$4 sm:$0xff]   ;;  %v2176_v63 = vld [vmem:[%s2440_s11 + $0x158] ss:$12 sps:$4 sm:$0xff]  }
  0x2c   : > { %v2174_v62 = vld [vmem:[%s2440_s11 + $0x10c] ss:$12 sps:$4 sm:$0xff]   ;;  %v2177_v0 = vld [vmem:[%s2440_s11 + $0x108] ss:$12 sps:$4 sm:$0xff]   ;;  %v2178_v1 = vld [vmem:[%s2440_s11 + $0x170] ss:$12 sps:$4 sm:$0xff]  }
  0x2d   : > { %s2550_s11 = sand.u32 1, %s2301_s16  }
  0x2e   : > { %1862 = vmatpush3.bf16.msra.mxu0 %v2112_v17  ;;  %2028 = vmatpush3.bf16.msra.mxu1 %v2112_v17  ;;  %s1596_s29 = sshll.u32 %s2550_s11, 7  ;;  %s1403_s10 = scalar_lea.sflag [#allocation4], %s2550_s11 }
  0x2f   : > { %1977 = vmatprep.subr.bf16.mxu1 %v2125_v18  ;;  %s2553_s30 = scalar_lea.vmem [#allocation3], %s1596_s29 }
  0x30   : > { %s1426_s6 = sshll.u32 %s2553_s30, 4  ;;  %s2602_s6 = int_to_ptr.vmem [resolvable:$true] %s1426_s6 }
  0x31   : > { %781 = vmatmul.mubr.bf16.vlgmr.msra.gmra.mrb[0].mxu0 %v2113_v19  ;;  %877 = vmatmul.mubr.bf16.vlgmr.msra.gmra.mrb[0].mxu1 %v2116_v20  ;;  %s2179_s12 = scalar_lea.vmem %s2602_s6, 2048  ;;  %p2186_p1 = scmp.lt.s32.totalorder %s2602_s6, %s2184_s14 }
  0x32   : > { %788 = vmatprep.mubr.bf16.mxu0 %v2119_v21  ;;  %884 = vmatprep.mubr.bf16.mxu1 %v2121_v22  ;;  %p2180_p12 = scmp.ne.s32.totalorder %s2602_s6, %s2179_s12  ;;  %p2187_p2 = scmp.lt.s32.totalorder %s2185_s24, %s2179_s12 }
  0x33   : > { %1978 = vmatpush3.bf16.msra.mxu1 %v2125_v18 }
  0x34   : > { %1979 = vmatprep.subr.bf16.mxu1 %v2138_v23  ;;  %p2181_p13 = pnand %p2180_p12, %p2391_p4  ;;  %p2188_p3 = por %p2187_p2, %p2186_p1 }
  0x36   : > { %p2182_p0 = pneg %p2181_p13 }
  0x37   : > { %1980 = vmatpush3.bf16.msra.mxu1 %v2138_v23 }
  0x38   : > { %p2189_p5 = pnand %p2188_p3, %p2182_p0 }
  0x39   : > { %789 = vmatmul.mubr.bf16.gmra.mrb[4].mxu0 %v2123_v24  ;;  %885 = vmatmul.mubr.bf16.gmra.mrb[4].mxu1 %v2124_v25 }
  0x3a   : > { %796 = vmatprep.mubr.bf16.mxu0 %v2126_v26  ;;  %892 = vmatprep.mubr.bf16.mxu1 %v2128_v27 }
  0x41   : > { %797 = vmatmul.mubr.bf16.gmra.mrb[8].mxu0 %v2130_v28  ;;  %893 = vmatmul.mubr.bf16.gmra.mrb[8].mxu1 %v2131_v29 }
  0x42   : > { %804 = vmatprep.mubr.bf16.mxu0 %v2132_v30  ;;  %900 = vmatprep.mubr.bf16.mxu1 %v2134_v31 }
  0x49   : > { %805 = vmatmul.mubr.bf16.gmra.mrb[12].mxu0 %v2136_v32  ;;  %901 = vmatmul.mubr.bf16.gmra.mrb[12].mxu1 %v2137_v33 }
  0x4a   : > { %812 = vmatprep.mubr.bf16.mxu0 %v2139_v34  ;;  %1981 = vmatprep.mubr.msk.bf16.mxu1 %vm699_vm0, %v2141_v35 }
  0x51   : > { %813 = vmatmul.mubr.bf16.gmra.mrb[16].mxu0 %v2142_v36  ;;  %1982 = vmatmul.mubr.msk.bf16.vlgmr.msra.gmra.mrb[16].mxu1 %vm699_vm0, %v2143_v37 }
  0x52   : > { %820 = vmatprep.mubr.bf16.mxu0 %v2144_v38  ;;  %1985 = vmatprep.mubr.msk.bf16.mxu1 %vm699_vm0, %v2146_v39 }
  0x59   : > { %821 = vmatmul.mubr.bf16.gmra.mrb[20].mxu0 %v2147_v40  ;;  %1986 = vmatmul.mubr.msk.bf16.gmra.mrb[20].mxu1 %vm699_vm0, %v2148_v41 }
  0x5a   : > { %828 = vmatprep.mubr.bf16.mxu0 %v2149_v42  ;;  %1989 = vmatprep.mubr.msk.bf16.mxu1 %vm699_vm0, %v2151_v43 }
  0x61   : > { %829 = vmatmul.mubr.bf16.gmra.mrb[24].mxu0 %v2152_v44  ;;  %1990 = vmatmul.mubr.msk.bf16.gmra.mrb[24].mxu1 %vm699_vm0, %v2153_v45 }
  0x62   : > { %836 = vmatprep.mubr.bf16.mxu0 %v2154_v46  ;;  %1993 = vmatprep.mubr.msk.bf16.mxu1 %vm699_vm0, %v2156_v47 }
  0x69   : > { %837 = vmatmul.mubr.bf16.gmra.mrb[28].mxu0 %v2157_v48  ;;  %1994 = vmatmul.mubr.msk.bf16.gmra.mrb[28].mxu1 %vm699_vm0, %v2158_v49 }
  0x6a   : > { %844 = vmatprep.mubr.bf16.mxu0 %v2159_v50  ;;  %1997 = vmatprep.mubr.msk.bf16.mxu1 %vm699_vm0, %v2161_v51 }
  0x71   : > { %845 = vmatmul.mubr.bf16.gmra.mrb[32].mxu0 %v2162_v52  ;;  %1998 = vmatmul.mubr.msk.bf16.gmra.mrb[32].mxu1 %vm699_vm0, %v2163_v53 }
  0x72   : > { %852 = vmatprep.mubr.bf16.mxu0 %v2164_v54  ;;  %2001 = vmatprep.mubr.msk.bf16.mxu1 %vm699_vm0, %v2166_v55 }
  0x79   : > { %853 = vmatmul.mubr.bf16.gmra.mrb[36].mxu0 %v2167_v56  ;;  %2002 = vmatmul.mubr.msk.bf16.gmra.mrb[36].mxu1 %vm699_vm0, %v2168_v57 }
  0x7a   : > { %860 = vmatprep.mubr.bf16.mxu0 %v2169_v58  ;;  %2005 = vmatprep.mubr.msk.bf16.mxu1 %vm699_vm0, %v2171_v59 }
  0x81   : > { %861 = vmatmul.mubr.bf16.gmra.mrb[40].mxu0 %v2172_v60  ;;  %2006 = vmatmul.mubr.msk.bf16.gmra.mrb[40].mxu1 %vm699_vm0, %v2173_v61 }
  0x82   : > { %868 = vmatprep.mubr.bf16.mxu0 %v2174_v62  ;;  %2009 = vmatprep.mubr.msk.bf16.mxu1 %vm699_vm0, %v2176_v63 }
  0x89   : > { %869 = vmatmul.mubr.bf16.gmra.mrb[44].mxu0 %v2177_v0  ;;  %2010 = vmatmul.mubr.msk.bf16.gmra.mrb[44].mxu1 %vm699_vm0, %v2178_v1 }
 0x104   : > { %v1863_v2 = vpop.f32.mrb[0].mxu0  ;;  %v1935_v3 = vpop.f32.mrb[0].mxu1 }
 0x105   : > { %v1864_v4 = vpop.f32.mrb[1].mxu0  ;;  %v1936_v5 = vpop.f32.mrb[1].mxu1 }
 0x106   : > { %v1865_v6 = vadd.f32 %v1864_v4, %v1863_v2  ;;  %v1866_v7 = vpop.f32.mrb[2].mxu0  ;;  %v2533_v8 = vadd.f32 %v1936_v5, %v1935_v3  ;;  %v1938_v9 = vpop.f32.mrb[2].mxu1 }
 0x107   : > { %v1867_v10 = vpop.f32.mrb[3].mxu0  ;;  %v1939_v11 = vpop.f32.mrb[3].mxu1 }
 0x108   : > { %v1868_v12 = vadd.f32 %v1867_v10, %v1866_v7  ;;  %v2535_v13 = vadd.f32 %v1939_v11, %v1938_v9 }
 0x10c   : > { %v1869_v14 = vpop.f32.mrb[4].mxu0  ;;  %v1941_v15 = vpop.f32.mrb[4].mxu1 }
 0x10d   : > { %v1870_v16 = vpop.f32.mrb[5].mxu0  ;;  %v1942_v17 = vpop.f32.mrb[5].mxu1 }
 0x10e   : > { %v1871_v18 = vadd.f32 %v1870_v16, %v1869_v14  ;;  %v1872_v19 = vpop.f32.mrb[6].mxu0  ;;  %v2537_v20 = vadd.f32 %v1942_v17, %v1941_v15  ;;  %v1944_v21 = vpop.f32.mrb[6].mxu1 }
 0x10f   : > { %v1873_v22 = vpop.f32.mrb[7].mxu0  ;;  %v1945_v23 = vpop.f32.mrb[7].mxu1 }
 0x110   : > { %v1874_v24 = vadd.f32 %v1873_v22, %v1872_v19  ;;  %v2539_v25 = vadd.f32 %v1945_v23, %v1944_v21 }
 0x114   : > { %v1875_v26 = vpop.f32.mrb[8].mxu0  ;;  %v1947_v27 = vpop.f32.mrb[8].mxu1 }
 0x115   : > { %v1876_v28 = vpop.f32.mrb[9].mxu0  ;;  %v1948_v29 = vpop.f32.mrb[9].mxu1 }
 0x116   : > { %v1877_v30 = vadd.f32 %v1876_v28, %v1875_v26  ;;  %v1878_v31 = vpop.f32.mrb[10].mxu0  ;;  %v2541_v32 = vadd.f32 %v1948_v29, %v1947_v27  ;;  %v1950_v33 = vpop.f32.mrb[10].mxu1 }
 0x117   : > { %v1879_v34 = vpop.f32.mrb[11].mxu0  ;;  %v1951_v35 = vpop.f32.mrb[11].mxu1 }
 0x118   : > { %v1880_v36 = vadd.f32 %v1879_v34, %v1878_v31  ;;  %v2543_v37 = vadd.f32 %v1951_v35, %v1950_v33 }
 0x11c   : > { %v1881_v38 = vpop.f32.mrb[12].mxu0  ;;  %v1953_v39 = vpop.f32.mrb[12].mxu1 }
 0x11d   : > { %v1882_v40 = vpop.f32.mrb[13].mxu0  ;;  %v1954_v41 = vpop.f32.mrb[13].mxu1 }
 0x11e   : > { %v1883_v42 = vadd.f32 %v1882_v40, %v1881_v38  ;;  %v1884_v43 = vpop.f32.mrb[14].mxu0  ;;  %v2545_v44 = vadd.f32 %v1954_v41, %v1953_v39  ;;  %v1956_v45 = vpop.f32.mrb[14].mxu1 }
 0x11f   : > { %v1885_v46 = vpop.f32.mrb[15].mxu0  ;;  %v1957_v47 = vpop.f32.mrb[15].mxu1 }
 0x120   : > { %v1886_v48 = vadd.f32 %v1885_v46, %v1884_v43  ;;  %v2547_v49 = vadd.f32 %v1957_v47, %v1956_v45 }
 0x124   : > { %v1887_v50 = vpop.f32.mrb[16].mxu0  ;;  %v1983_v51 = vpop.f32.mrb[16].mxu1 }
 0x125   : > { %v952_v52 = vadd.f32 %v1983_v51, %v1871_v18  ;;  %v1888_v53 = vpop.f32.mrb[17].mxu0  ;;  %v943_v54 = vpop.f32.mrb[17].mxu1 }
 0x126   : > { %v1889_v55 = vadd.f32 %v1888_v53, %v1887_v50  ;;  %v944_v56 = vadd.f32 %v1865_v6, %v943_v54  ;;  %v1890_v57 = vpop.f32.mrb[18].mxu0  ;;  %v1984_v58 = vpop.f32.mrb[18].mxu1 }
 0x127   : > { %v955_v59 = vadd.f32 %v1984_v58, %v1874_v24  ;;  %v1891_v60 = vpop.f32.mrb[19].mxu0  ;;  %v946_v61 = vpop.f32.mrb[19].mxu1  ;;  %v1334_v5 = vmul.f32 %v952_v52, %v952_v52 }
 0x128   : > { %v1892_v62 = vadd.f32 %v1891_v60, %v1890_v57  ;;  %v947_v63 = vadd.f32 %v1868_v12, %v946_v61  ;;  %v1332_v1 = vmul.f32 %v944_v56, %v944_v56 }
 0x129   : > { %v1760_v0 = vpack.c.bf16 %v955_v59, %v952_v52  ;;  %v1335_v11 = vmul.f32 %v955_v59, %v955_v59 }
 0x12a   : > { %v1755_v2 = vpack.c.bf16 %v947_v63, %v944_v56  ;;  %v1294_v3 = vadd.f32 %v947_v63, %v944_v56  ;;  %v1333_v4 = vmul.f32 %v947_v63, %v947_v63 }
 0x12b   : > { %1832 = vst [vmem:[%s2553_s30 + $0x8] sm:$0xff] %v1760_v0  }
 0x12c   : > { %1756 = vst [vmem:[%s2553_s30] sm:$0xff] %v1755_v2   ;;  %v1295_v6 = vadd.f32 %v1294_v3, %v952_v52  ;;  %v1364_v7 = vadd.f32 %v1333_v4, %v1332_v1  ;;  %v1893_v9 = vpop.f32.mrb[20].mxu0  ;;  %v1987_v10 = vpop.f32.mrb[20].mxu1 }
 0x12d   : > { %v968_v14 = vadd.f32 %v1987_v10, %v1883_v42  ;;  %v1894_v15 = vpop.f32.mrb[21].mxu0  ;;  %v959_v12 = vpop.f32.mrb[21].mxu1 }
 0x12e   : > { %v1365_v16 = vadd.f32 %v1364_v7, %v1334_v5  ;;  %v1895_v17 = vadd.f32 %v1894_v15, %v1893_v9  ;;  %v960_v18 = vadd.f32 %v1877_v30, %v959_v12  ;;  %v1296_v19 = vadd.f32 %v1295_v6, %v955_v59  ;;  %v1896_v21 = vpop.f32.mrb[22].mxu0  ;;  %v1988_v22 = vpop.f32.mrb[22].mxu1 }
 0x12f   : > { %v971_v23 = vadd.f32 %v1988_v22, %v1886_v48  ;;  %v1897_v24 = vpop.f32.mrb[23].mxu0  ;;  %v962_v26 = vpop.f32.mrb[23].mxu1  ;;  %v1338_v42 = vmul.f32 %v968_v14, %v968_v14 }
 0x130   : > { %v1297_v27 = vadd.f32 %v1296_v19, %v960_v18  ;;  %v1336_v28 = vmul.f32 %v960_v18, %v960_v18  ;;  %v1366_v29 = vadd.f32 %v1365_v16, %v1335_v11  ;;  %v1898_v31 = vadd.f32 %v1897_v24, %v1896_v21 }
 0x131   : > { %v1770_v33 = vpack.c.bf16 %v971_v23, %v968_v14  ;;  %v963_v34 = vadd.f32 %v1880_v36, %v962_v26  ;;  %v1339_v36 = vmul.f32 %v971_v23, %v971_v23 }
 0x132   : > { %v1367_v35 = vadd.f32 %v1366_v29, %v1336_v28 }
 0x133   : > { %1834 = vst [vmem:[%s2553_s30 + $0x18] sm:$0xff] %v1770_v33   ;;  %v1765_v38 = vpack.c.bf16 %v963_v34, %v960_v18  ;;  %v1298_v39 = vadd.f32 %v1297_v27, %v963_v34  ;;  %v1337_v40 = vmul.f32 %v963_v34, %v963_v34 }
 0x134   : > { %v1899_v41 = vpop.f32.mrb[24].mxu0  ;;  %v1991_v30 = vpop.f32.mrb[24].mxu1 }
 0x135   : > { %1833 = vst [vmem:[%s2553_s30 + $0x10] sm:$0xff] %v1765_v38   ;;  %v1299_v43 = vadd.f32 %v1298_v39, %v968_v14  ;;  %v1368_v45 = vadd.f32 %v1367_v35, %v1337_v40  ;;  %v984_v46 = vadd.f32 %v1991_v30, %v1895_v17  ;;  %v1900_v47 = vpop.f32.mrb[25].mxu0  ;;  %v975_v48 = vpop.f32.mrb[25].mxu1 }
 0x136   : > { %v1901_v50 = vadd.f32 %v1900_v47, %v1899_v41  ;;  %v976_v51 = vadd.f32 %v1889_v55, %v975_v48  ;;  %v1902_v52 = vpop.f32.mrb[26].mxu0  ;;  %v1992_v53 = vpop.f32.mrb[26].mxu1 }
 0x137   : > { %v1369_v54 = vadd.f32 %v1368_v45, %v1338_v42  ;;  %v1300_v56 = vadd.f32 %v1299_v43, %v971_v23  ;;  %v987_v57 = vadd.f32 %v1992_v53, %v1898_v31  ;;  %v1903_v58 = vpop.f32.mrb[27].mxu0  ;;  %v978_v59 = vpop.f32.mrb[27].mxu1  ;;  %v1342_v9 = vmul.f32 %v984_v46, %v984_v46 }
 0x138   : > { %v1340_v60 = vmul.f32 %v976_v51, %v976_v51  ;;  %v1904_v61 = vadd.f32 %v1903_v58, %v1902_v52  ;;  %v979_v63 = vadd.f32 %v1892_v62, %v978_v59 }
 0x139   : > { %v1301_v0 = vadd.f32 %v1300_v56, %v976_v51  ;;  %v1370_v1 = vadd.f32 %v1369_v54, %v1339_v36  ;;  %v1780_v2 = vpack.c.bf16 %v987_v57, %v984_v46  ;;  %v1343_v18 = vmul.f32 %v987_v57, %v987_v57 }
 0x13a   : > { %v1775_v3 = vpack.c.bf16 %v979_v63, %v976_v51  ;;  %v1341_v4 = vmul.f32 %v979_v63, %v979_v63 }
 0x13b   : > { %v1371_v5 = vadd.f32 %v1370_v1, %v1340_v60  ;;  %1836 = vst [vmem:[%s2553_s30 + $0x28] sm:$0xff] %v1780_v2   ;;  %v1302_v55 = vadd.f32 %v1301_v0, %v979_v63 }
 0x13c   : > { %1835 = vst [vmem:[%s2553_s30 + $0x20] sm:$0xff] %v1775_v3   ;;  %v1905_v6 = vpop.f32.mrb[28].mxu0  ;;  %v1995_v7 = vpop.f32.mrb[28].mxu1 }
 0x13d   : > { %v1303_v10 = vadd.f32 %v1302_v55, %v984_v46  ;;  %v1372_v11 = vadd.f32 %v1371_v5, %v1341_v4  ;;  %v1906_v14 = vpop.f32.mrb[29].mxu0  ;;  %v991_v15 = vpop.f32.mrb[29].mxu1 }
 0x13e   : > { %v1907_v12 = vadd.f32 %v1906_v14, %v1905_v6  ;;  %v992_v16 = vadd.f32 %v1901_v50, %v991_v15  ;;  %v1908_v17 = vpop.f32.mrb[30].mxu0  ;;  %v1996_v62 = vpop.f32.mrb[30].mxu1 }
 0x13f   : > { %v1373_v19 = vadd.f32 %v1372_v11, %v1342_v9  ;;  %v1304_v21 = vadd.f32 %v1303_v10, %v987_v57  ;;  %v1909_v22 = vpop.f32.mrb[31].mxu0  ;;  %v994_v23 = vpop.f32.mrb[31].mxu1 }
 0x140   : > { %v1000_v24 = vadd.f32 %v1995_v7, %v1907_v12  ;;  %v1344_v26 = vmul.f32 %v992_v16, %v992_v16  ;;  %v1910_v27 = vadd.f32 %v1909_v22, %v1908_v17  ;;  %v995_v28 = vadd.f32 %v1904_v61, %v994_v23 }
 0x141   : > { %v1305_v29 = vadd.f32 %v1304_v21, %v992_v16  ;;  %v1374_v31 = vadd.f32 %v1373_v19, %v1343_v18 }
 0x142   : > { %v1003_v33 = vadd.f32 %v1996_v62, %v1910_v27  ;;  %v1785_v34 = vpack.c.bf16 %v995_v28, %v992_v16  ;;  %v1345_v35 = vmul.f32 %v995_v28, %v995_v28  ;;  %v1346_v42 = vmul.f32 %v1000_v24, %v1000_v24 }
 0x143   : > { %v1375_v38 = vadd.f32 %v1374_v31, %v1344_v26  ;;  %v1306_v39 = vadd.f32 %v1305_v29, %v995_v28 }
 0x144   : > { %v1790_v40 = vpack.c.bf16 %v1003_v33, %v1000_v24  ;;  %1837 = vst [vmem:[%s2553_s30 + $0x30] sm:$0xff] %v1785_v34   ;;  %v1911_v41 = vpop.f32.mrb[32].mxu0  ;;  %v1999_v30 = vpop.f32.mrb[32].mxu1  ;;  %v1347_v52 = vmul.f32 %v1003_v33, %v1003_v33 }
 0x145   : > { %v1307_v43 = vadd.f32 %v1306_v39, %v1000_v24  ;;  %v1376_v45 = vadd.f32 %v1375_v38, %v1345_v35  ;;  %v1912_v46 = vpop.f32.mrb[33].mxu0  ;;  %v1007_v47 = vpop.f32.mrb[33].mxu1 }
 0x146   : > { %1838 = vst [vmem:[%s2553_s30 + $0x38] sm:$0xff] %v1790_v40   ;;  %v1913_v48 = vadd.f32 %v1912_v46, %v1911_v41  ;;  %v1914_v50 = vpop.f32.mrb[34].mxu0  ;;  %v2000_v51 = vpop.f32.mrb[34].mxu1 }
 0x147   : > { %v1377_v53 = vadd.f32 %v1376_v45, %v1346_v42  ;;  %v1915_v36 = vpop.f32.mrb[35].mxu0  ;;  %v1308_v54 = vadd.f32 %v1307_v43, %v1003_v33  ;;  %v1010_v56 = vpop.f32.mrb[35].mxu1 }
 0x148   : > { %v1916_v57 = vadd.f32 %v1915_v36, %v1914_v50  ;;  %v1008_v58 = vadd.f32 %v1913_v48, %v1007_v47 }
 0x149   : > { %v1378_v59 = vadd.f32 %v1377_v53, %v1347_v52 }
 0x14a   : > { %v1309_v60 = vadd.f32 %v1308_v54, %v1008_v58  ;;  %v1348_v61 = vmul.f32 %v1008_v58, %v1008_v58  ;;  %v1011_v63 = vadd.f32 %v1916_v57, %v1010_v56 }
 0x14c   : > { %v1379_v0 = vadd.f32 %v1378_v59, %v1348_v61  ;;  %v1795_v1 = vpack.c.bf16 %v1011_v63, %v1008_v58  ;;  %v1310_v2 = vadd.f32 %v1309_v60, %v1011_v63  ;;  %v1349_v3 = vmul.f32 %v1011_v63, %v1011_v63  ;;  %v1917_v4 = vpop.f32.mrb[36].mxu0  ;;  %v2003_v5 = vpop.f32.mrb[36].mxu1 }
 0x14d   : > { %v1918_v55 = vpop.f32.mrb[37].mxu0  ;;  %v1023_v6 = vpop.f32.mrb[37].mxu1 }
 0x14e   : > { %1839 = vst [vmem:[%s2553_s30 + $0x40] sm:$0xff] %v1795_v1   ;;  %v1380_v7 = vadd.f32 %v1379_v0, %v1349_v3  ;;  %v1919_v9 = vadd.f32 %v1918_v55, %v1917_v4  ;;  %v1920_v10 = vpop.f32.mrb[38].mxu0  ;;  %v2004_v11 = vpop.f32.mrb[38].mxu1 }
 0x14f   : > { %v1921_v14 = vpop.f32.mrb[39].mxu0  ;;  %v1026_v15 = vpop.f32.mrb[39].mxu1 }
 0x150   : > { %v1016_v12 = vadd.f32 %v1999_v30, %v1919_v9  ;;  %v1922_v16 = vadd.f32 %v1921_v14, %v1920_v10 }
 0x152   : > { %v1311_v17 = vadd.f32 %v1310_v2, %v1016_v12  ;;  %v1350_v62 = vmul.f32 %v1016_v12, %v1016_v12  ;;  %v1019_v18 = vadd.f32 %v2000_v51, %v1922_v16 }
 0x154   : > { %v1381_v19 = vadd.f32 %v1380_v7, %v1350_v62  ;;  %v1800_v21 = vpack.c.bf16 %v1019_v18, %v1016_v12  ;;  %v1312_v22 = vadd.f32 %v1311_v17, %v1019_v18  ;;  %v1351_v23 = vmul.f32 %v1019_v18, %v1019_v18  ;;  %v1923_v24 = vpop.f32.mrb[40].mxu0  ;;  %v2007_v26 = vpop.f32.mrb[40].mxu1 }
 0x155   : > { %v2565_v27 = vadd.f32 %v2007_v26, %v2537_v20  ;;  %v1924_v28 = vpop.f32.mrb[41].mxu0  ;;  %v1039_v29 = vpop.f32.mrb[41].mxu1 }
 0x156   : > { %1840 = vst [vmem:[%s2553_s30 + $0x48] sm:$0xff] %v1800_v21   ;;  %v1382_v31 = vadd.f32 %v1381_v19, %v1351_v23  ;;  %v1925_v33 = vadd.f32 %v1924_v28, %v1923_v24  ;;  %v1040_v34 = vadd.f32 %v2533_v8, %v1039_v29  ;;  %v1926_v35 = vpop.f32.mrb[42].mxu0  ;;  %v2008_v38 = vpop.f32.mrb[42].mxu1 }
 0x157   : > { %v2570_v39 = vadd.f32 %v2008_v38, %v2539_v25  ;;  %v1927_v40 = vpop.f32.mrb[43].mxu0  ;;  %v1042_v41 = vpop.f32.mrb[43].mxu1 }
 0x158   : > { %v1024_v30 = vadd.f32 %v1925_v33, %v1023_v6  ;;  %v1928_v42 = vadd.f32 %v1927_v40, %v1926_v35  ;;  %v2573_v20 = vadd.f32 %v2535_v13, %v1042_v41  ;;  %v1356_v9 = vmul.f32 %v1040_v34, %v1040_v34 }
 0x159   : > { %v1820_v43 = vpack.c.bf16 %v2570_v39, %v2565_v27 }
 0x15a   : > { %v1313_v45 = vadd.f32 %v1312_v22, %v1024_v30  ;;  %v1352_v46 = vmul.f32 %v1024_v30, %v1024_v30  ;;  %v1027_v8 = vadd.f32 %v1928_v42, %v1026_v15  ;;  %v1815_v47 = vpack.c.bf16 %v2573_v20, %v1040_v34 }
 0x15b   : > { %1844 = vst [vmem:[%s2553_s30 + $0x68] sm:$0xff] %v1820_v43  }
 0x15c   : > { %v1383_v25 = vadd.f32 %v1382_v31, %v1352_v46  ;;  %v1805_v48 = vpack.c.bf16 %v1027_v8, %v1024_v30  ;;  %v1314_v50 = vadd.f32 %v1313_v45, %v1027_v8  ;;  %v1353_v51 = vmul.f32 %v1027_v8, %v1027_v8  ;;  %1843 = vst [vmem:[%s2553_s30 + $0x60] sm:$0xff] %v1815_v47   ;;  %v1929_v52 = vpop.f32.mrb[44].mxu0  ;;  %v2011_v53 = vpop.f32.mrb[44].mxu1 }
 0x15d   : > { %v2581_v13 = vadd.f32 %v2011_v53, %v2545_v44  ;;  %v1930_v36 = vpop.f32.mrb[45].mxu0  ;;  %v1055_v54 = vpop.f32.mrb[45].mxu1 }
 0x15e   : > { %1841 = vst [vmem:[%s2553_s30 + $0x50] sm:$0xff] %v1805_v48   ;;  %v1384_v56 = vadd.f32 %v1383_v25, %v1353_v51  ;;  %v1931_v57 = vadd.f32 %v1930_v36, %v1929_v52  ;;  %v2585_v58 = vadd.f32 %v2541_v32, %v1055_v54  ;;  %v1932_v59 = vpop.f32.mrb[46].mxu0  ;;  %v2012_v60 = vpop.f32.mrb[46].mxu1 }
 0x15f   : > { %v2588_v61 = vadd.f32 %v2012_v60, %v2547_v49  ;;  %v1933_v63 = vpop.f32.mrb[47].mxu0  ;;  %v1058_v0 = vpop.f32.mrb[47].mxu1 }
 0x160   : > { %v1032_v1 = vadd.f32 %v2003_v5, %v1931_v57  ;;  %v1934_v44 = vadd.f32 %v1933_v63, %v1932_v59  ;;  %v1059_v2 = vadd.f32 %v2543_v37, %v1058_v0 }
 0x161   : > { %v1830_v32 = vpack.c.bf16 %v2588_v61, %v2581_v13 }
 0x162   : > { %v1315_v3 = vadd.f32 %v1314_v50, %v1032_v1  ;;  %v1354_v4 = vmul.f32 %v1032_v1, %v1032_v1  ;;  %v1035_v55 = vadd.f32 %v2004_v11, %v1934_v44  ;;  %v1825_v49 = vpack.c.bf16 %v1059_v2, %v2585_v58 }
 0x163   : > { %1846 = vst [vmem:[%s2553_s30 + $0x78] sm:$0xff] %v1830_v32  }
 0x164   : > { %v1385_v37 = vadd.f32 %v1384_v56, %v1354_v4  ;;  %v1810_v5 = vpack.c.bf16 %v1035_v55, %v1032_v1  ;;  %v1316_v6 = vadd.f32 %v1315_v3, %v1035_v55  ;;  %v1355_v7 = vmul.f32 %v1035_v55, %v1035_v55  ;;  %1845 = vst [vmem:[%s2553_s30 + $0x70] sm:$0xff] %v1825_v49  }
 0x166   : > { %1842 = vst [vmem:[%s2553_s30 + $0x58] sm:$0xff] %v1810_v5   ;;  %v1317_v10 = vadd.f32 %v1316_v6, %v1040_v34  ;;  %v1386_v11 = vadd.f32 %v1385_v37, %v1355_v7 }
 0x167   : > { %2192 = shalt.err (!%p2189_p5)
}
 0x168   : > { %s2193_s26 = scalar_lea.hbm %s2600_s9, 2048  ;;  %s2197_s5 = scalar_lea.hbm %s2746_s2, 4096 }
 0x169   : > { %p2194_p6 = scmp.ne.s32.totalorder %s2600_s9, %s2193_s26  ;;  %p2198_p10 = scmp.lt.u32.totalorder %s2600_s9, %s2746_s2 }
 0x16a   : > { %p2199_p11 = scmp.lt.u32.totalorder %s2197_s5, %s2193_s26  ;;  %p2201_p13 = scmp.lt.u32.totalorder %s2193_s26, %s2600_s9 }
 0x16b   : > { %p2195_p7 = pnand %p2194_p6, %p2391_p4 }
 0x16c   : > { %p2200_p12 = por %p2199_p11, %p2198_p10 }
 0x16d   : > { %p2196_p9 = pneg %p2195_p7 }
 0x16e   : > { %p2202_p0 = por %p2201_p13, %p2200_p12 }
 0x170   : > { %p2203_p1 = pnand %p2202_p0, %p2196_p9 }
 0x172   : > { %2206 = shalt.err (!%p2203_p1)
}
 0x173   : > { %s2320_s12 = smov 64   ;;  %s2321_s13 = smov 4   ;;  %v1357_v14 = vmul.f32 %v2573_v20, %v2573_v20  ;;  %v1318_v15 = vadd.f32 %v1317_v10, %v2573_v20  ;;  %v1387_v12 = vadd.f32 %v1386_v11, %v1356_v9  ;;  %v1358_v16 = vmul.f32 %v2565_v27, %v2565_v27 }
 0x174   : > { %2030 = dma.vmem_to_hbm [thread:$0]  (%p2391_p4), %s2602_s6, 2048, %s2600_s9, %s1403_s10, %s2320_s12, %s2320_s12, %s2321_s13   ;;  %v1359_v18 = vmul.f32 %v2570_v39, %v2570_v39  ;;  %v1360_v22 = vmul.f32 %v2585_v58, %v2585_v58  ;;  %v1361_v28 = vmul.f32 %v1059_v2, %v1059_v2  ;;  %v1363_v34 = vmul.f32 %v2588_v61, %v2588_v61 }
 0x175   : > { %v1388_v17 = vadd.f32 %v1387_v12, %v1357_v14  ;;  %v1319_v62 = vadd.f32 %v1318_v15, %v2565_v27  ;;  %v1362_v27 = vmul.f32 %v2581_v13, %v2581_v13  ;;  %s2650_s6 = sand.u32 1, %s1591_s21   ;;  %s1715_s9 = sshll.u32 %s2309_s18, 4 }
 0x176   : > { %s231_s10 = scalar_lea.vmem [#allocation5], %s2550_s11  ;;  %s237_s24 = scalar_lea.vmem [#allocation7], %s2550_s11 }
 0x177   : > { %v1320_v19 = vadd.f32 %v1319_v62, %v2570_v39  ;;  %v1389_v21 = vadd.f32 %v1388_v17, %v1358_v16  ;;  %s1443_s14 = sshll.u32 %s231_s10, 4  ;;  %s1457_s26 = sshll.u32 %s237_s24, 4  ;;  %s2662_s14 = int_to_ptr.vmem [resolvable:$true] %s1443_s14  ;;  %s2669_s26 = int_to_ptr.vmem [resolvable:$true] %s1457_s26 }
 0x178   : > { %s2660_s5 = scalar_lea.hbm %s2747_s3, %s1715_s9  ;;  %s2667_s7 = scalar_lea.hbm %s2748_s4, %s1715_s9 }
 0x179   : > { %v1321_v23 = vadd.f32 %v1320_v19, %v2585_v58  ;;  %v1390_v24 = vadd.f32 %v1389_v21, %v1359_v18  ;;  %s1408_s8 = scalar_lea.sflag [#allocation6], %s2650_s6  ;;  %s2207_s12 = scalar_lea.vmem %s2662_s14, 16 }
 0x17a   : > { %p2208_p2 = scmp.ne.s32.totalorder %s2662_s14, %s2207_s12  ;;  %s2322_s13 = smov [#allocation5]  }
 0x17b   : > { %v1322_v26 = vadd.f32 %v1321_v23, %v1059_v2  ;;  %v1391_v29 = vadd.f32 %v1390_v24, %v1360_v22  ;;  %s2211_s29 = sshll.u32 %s2322_s13, 4  ;;  %s2212_s29 = int_to_ptr.vmem [resolvable:$false] %s2211_s29 }
 0x17c   : > { %p2209_p3 = pnand %p2208_p2, %p2391_p4  ;;  %s2213_s30 = scalar_lea.vmem %s2212_s29, 32 }
 0x17d   : > { %v1323_v31 = vadd.f32 %v1322_v26, %v2581_v13  ;;  %v1392_v33 = vadd.f32 %v1391_v29, %v1361_v28  ;;  %p2214_p6 = scmp.lt.s32.totalorder %s2662_s14, %s2212_s29  ;;  %p2215_p7 = scmp.lt.s32.totalorder %s2213_s30, %s2207_s12 }
 0x17e   : > { %p2210_p5 = pneg %p2209_p3 }
 0x17f   : > { %v1324_v35 = vadd.f32 %v1323_v31, %v2588_v61  ;;  %v1393_v38 = vadd.f32 %v1392_v33, %v1362_v27  ;;  %p2216_p9 = por %p2215_p7, %p2214_p6 }
 0x181   : > { %v1325_v39 = vrot.slane %v1324_v35, 4  ;;  %v1394_v40 = vadd.f32 %v1393_v38, %v1363_v34  ;;  %p2217_p10 = pnand %p2216_p9, %p2210_p5 }
 0x183   : > { %v1395_v41 = vrot.slane %v1394_v40, 4  ;;  %v1326_v30 = vadd.f32 %v1325_v39, %v1324_v35 }
 0x185   : > { %v1327_v42 = vrot.slane %v1326_v30, 2  ;;  %v1396_v20 = vadd.f32 %v1395_v41, %v1394_v40 }
 0x187   : > { %v1328_v43 = vadd.f32 %v1327_v42, %v1326_v30  ;;  %v1397_v45 = vrot.slane %v1396_v20, 2 }
 0x189   : > { %v1329_v46 = vrot.slane %v1328_v43, 1  ;;  %v1398_v8 = vadd.f32 %v1397_v45, %v1396_v20 }
 0x18b   : > { %v1330_v47 = vadd.f32 %v1329_v46, %v1328_v43  ;;  %v1399_v25 = vrot.slane %v1398_v8, 1 }
 0x18d   : > { %1331 = vst [vmem:[%s231_s10] sm:$0x1] %v1330_v47  ;;  %v1400_v48 = vadd.f32 %v1399_v25, %v1398_v8 }
 0x18e   : > { %2220 = shalt.err (!%p2217_p10)
}
 0x18f   : > { %s2221_s9 = scalar_lea.hbm %s2660_s5, 16  ;;  %s2225_s21 = scalar_lea.hbm %s2747_s3, 32 }
 0x190   : > { %p2222_p11 = scmp.ne.s32.totalorder %s2660_s5, %s2221_s9  ;;  %p2226_p0 = scmp.lt.u32.totalorder %s2660_s5, %s2747_s3 }
 0x191   : > { %p2227_p1 = scmp.lt.u32.totalorder %s2225_s21, %s2221_s9  ;;  %p2229_p3 = scmp.lt.u32.totalorder %s2221_s9, %s2660_s5 }
 0x192   : > { %p2223_p12 = pnand %p2222_p11, %p2391_p4 }
 0x193   : > { %p2228_p2 = por %p2227_p1, %p2226_p0 }
 0x194   : > { %p2224_p13 = pneg %p2223_p12 }
 0x195   : > { %p2230_p5 = por %p2229_p3, %p2228_p2 }
 0x197   : > { %p2231_p6 = pnand %p2230_p5, %p2224_p13 }
 0x199   : > { %2234 = shalt.err (!%p2231_p6)
}
 0x19a   : > { %2031 = dma.vmem_to_hbm [thread:$0]  (%p2391_p4), %s2662_s14, 16, %s2660_s5, %s1408_s8   ;;  %1401 = vst [vmem:[%s237_s24] sm:$0x1] %v1400_v48 }
 0x19b   : > { %s2235_s12 = scalar_lea.vmem %s2669_s26, 16  ;;  %s2323_s30 = smov [#allocation7]  }
 0x19c   : > { %p2236_p7 = scmp.ne.s32.totalorder %s2669_s26, %s2235_s12  ;;  %s2239_s9 = sshll.u32 %s2323_s30, 4  ;;  %s2240_s9 = int_to_ptr.vmem [resolvable:$false] %s2239_s9 }
 0x19d   : > { %s2241_s10 = scalar_lea.vmem %s2240_s9, 32  ;;  %p2242_p11 = scmp.lt.s32.totalorder %s2669_s26, %s2240_s9 }
 0x19e   : > { %p2237_p9 = pnand %p2236_p7, %p2391_p4  ;;  %p2243_p12 = scmp.lt.s32.totalorder %s2241_s10, %s2235_s12 }
 0x1a0   : > { %p2238_p10 = pneg %p2237_p9  ;;  %p2244_p13 = por %p2243_p12, %p2242_p11 }
 0x1a2   : > { %p2245_p0 = pnand %p2244_p13, %p2238_p10 }
 0x1a4   : > { %2248 = shalt.err (!%p2245_p0)
}
 0x1a5   : > { %s2249_s11 = scalar_lea.hbm %s2667_s7, 16  ;;  %s2253_s5 = scalar_lea.hbm %s2748_s4, 32 }
 0x1a6   : > { %p2250_p1 = scmp.ne.s32.totalorder %s2667_s7, %s2249_s11  ;;  %p2254_p5 = scmp.lt.u32.totalorder %s2667_s7, %s2748_s4 }
 0x1a7   : > { %p2255_p6 = scmp.lt.u32.totalorder %s2253_s5, %s2249_s11  ;;  %p2257_p9 = scmp.lt.u32.totalorder %s2249_s11, %s2667_s7 }
 0x1a8   : > { %p2251_p2 = pnand %p2250_p1, %p2391_p4 }
 0x1a9   : > { %p2256_p7 = por %p2255_p6, %p2254_p5 }
 0x1aa   : > { %p2252_p3 = pneg %p2251_p2 }
 0x1ab   : > { %p2258_p10 = por %p2257_p9, %p2256_p7 }
 0x1ad   : > { %p2259_p11 = pnand %p2258_p10, %p2252_p3 }
 0x1af   : > { %2262 = shalt.err (!%p2259_p11)
}
 0x1b0   : > { %2032 = dma.vmem_to_hbm [thread:$0]  (%p2391_p4), %s2669_s26, 16, %s2667_s7, %s1408_s8  }
 0x1b1 PF: > { %p2046_p12 = scmp.ge.s32.totalorder %s2317_s20, 2  ;;  %s1469_s13 = sand.u32 1, %s2297_s15  }
 0x1b2   : > { %s1470_s29 = scalar_lea.sflag [#allocation4], %s1469_s13 }
 0x1b3   : > { %p2037_p13 = pnand %p2046_p12, %p2400_p8 }
 0x1b5   : > { %2288 = dma.done.wait (!%p2037_p13), %s1470_s29, 2048  }
 0x1b6   : > { %2290 = vsyncadd (!%p2037_p13), %s1470_s29, 4294965248  ;;  %s1478_s12 = sand.u32 1, %s1592_s22  }
 0x1b7   : > { %s1479_s25 = scalar_lea.sflag [#allocation6], %s1478_s12 }
 0x1b8   : > { %2292 = dma.done.wait (!%p2037_p13), %s1479_s25, 32  }
 0x1b9   : > { %2294 = vsyncadd (!%p2037_p13), %s1479_s25, 4294967264  ;;  %s21_s20 = sadd.s32 1, %s2317_s20   ;;  %s2751_s15 = smov %s2301_s16 }
 0x1ba   : > { %p18_p4 = scmp.ge.s32.totalorder %s21_s20, 4   ;;  %s2752_s16 = smov %s2305_s17 }
 0x1bb   : > { %s2753_s17 = smov %s2406_s28  ;;  %s2754_s18 = smov %s2313_s19 }
 0x1bc   : > { %s2755_s19 = smov %s2757_s23  ;;  %20 = sbr.rel (!%p18_p4) target bundleno = 6 (0x6), region = 95 }
 0x1c3   :  { %1491 = vsyncpa [#allocation4], 1 }
 0x1c4   :  { %1493 = vsyncpa [#allocation4 + $0x1], 1 }
 0x1c5   :  { %1494 = vsyncpa [#allocation6], 1 }
 0x1c6   :  { %1496 = vsyncpa [#allocation6 + $0x1], 1 }

</bundles_post_ra>
